<compile_context>
chip_gen: v7x
topology: tpu7x:2x2x1
jax: 0.10.0
libtpu: 0.0.40
codegen_flags: <defaults>
</compile_context>

<pallas_src>
import jax
import jax.numpy as jnp
from jax.experimental import pallas as pl
from jax.experimental.pallas import tpu as pltpu


def _round_up(x, m):
    return ((x + m - 1) // m) * m


def _device_kind():
    try:
        return jax.devices()[0].device_kind.lower()
    except Exception:
        return ""


def _is_v7x():
    return "v7" in _device_kind()


def _vmem_budget():
    """(tile-selection budget, vmem_limit_bytes) per TPU generation."""
    if _is_v7x():
        # 64 MiB physical per TC -> stay well under it.
        return 36 * 1024 * 1024, 48 * 1024 * 1024
    # v5e / v6e: 128 MiB physical; raise the (16/32 MiB) scoped default.
    return 48 * 1024 * 1024, 64 * 1024 * 1024


def _max_tm_under_budget(budget, tn, tk, k_steps, cb, ob):
    """Largest tm (rows) whose double-buffered footprint fits `budget`."""
    per_row = 2 * tk * cb + 2 * tn * ob + (tn * 4 if k_steps > 1 else 0)
    fixed = 2 * tk * tn * cb  # W block (conservatively counted double-buffered)
    return max(0, (budget - fixed) // per_row)


def _pick_tm(M, pack_m, max_tm):
    """Row-tile choice with bounded padding waste."""
    max_tm = max(pack_m, (max_tm // pack_m) * pack_m)
    m_pad0 = _round_up(M, pack_m)
    if m_pad0 <= max_tm:
        return m_pad0  # single row block, waste < pack_m rows
    cands = [c for c in (1024, 512, 256, 128, 64, 32, 16, 8)
             if c <= max_tm and c % pack_m == 0]
    thresh = max(M // 8, pack_m)  # allow at most ~12.5% padded rows
    for c in cands:
        if _round_up(M, c) - M <= thresh:
            return c
    return cands[-1]


# ---------------------------------------------------------------------------
# Kernels
# ---------------------------------------------------------------------------
def _matmul_relu_kernel_1k(x_ref, w_ref, o_ref):
    # Single reduction step: no accumulator scratch, fused ReLU + cast.
    o_ref[...] = jnp.maximum(
        jnp.dot(x_ref[...], w_ref[...], preferred_element_type=jnp.float32),
        0.0,
    ).astype(o_ref.dtype)


def _matmul_relu_kernel_acc(x_ref, w_ref, o_ref, acc_ref):
    k = pl.program_id(2)

    @pl.when(k == 0)
    def _():
        acc_ref[...] = jnp.zeros_like(acc_ref)

    acc_ref[...] += jnp.dot(
        x_ref[...], w_ref[...], preferred_element_type=jnp.float32
    )

    @pl.when(k == pl.num_programs(2) - 1)
    def _():
        o_ref[...] = jnp.maximum(acc_ref[...], 0.0).astype(o_ref.dtype)


# ---------------------------------------------------------------------------
# Wrapper
# ---------------------------------------------------------------------------
def learnable_kernel_forward(x, weight, *, compute_dtype=jnp.bfloat16):
    """ReLU(x @ weight). x: [..., D], weight: [D, D].

    compute_dtype: operand dtype fed to the MXU (accumulation is always f32).
    Default bf16 (native MXU throughput); pass jnp.float32 (or None to keep
    the input dtype) for exact f32 operand semantics.
    """
    orig_shape = x.shape
    D = weight.shape[0]
    assert orig_shape[-1] == D and weight.shape == (D, D)
    out_dtype = x.dtype

    x2d = x.reshape(-1, D)
    M = x2d.shape[0]

    cdt = jnp.dtype(compute_dtype) if compute_dtype is not None else jnp.dtype(x.dtype)
    cb = cdt.itemsize
    ob = jnp.dtype(out_dtype).itemsize
    pack_m = max(8, 32 // cb)          # sublane packing: 8 f32 / 16 bf16 / 32 int8

    lane_d = _round_up(D, 128)         # lane dims only ever pad to 128
    m_pad0 = _round_up(M, pack_m)

    budget, vmem_limit = _vmem_budget()

    # ---- tile selection -------------------------------------------------
    max_tm_res = _max_tm_under_budget(budget, lane_d, lane_d, 1, cb, ob)
    if max_tm_res >= min(m_pad0, 128):
        # Weight-resident: W DMA'd once, single streaming pass over x.
        resident = True
        tn = tk = lane_d
        k_steps = 1
        max_tm = max_tm_res
    else:
        resident = False
        tk = max(c for c in (1024, 512, 256, 128) if lane_d % c == 0)
        tn = max(c for c in (512, 256, 128) if lane_d % c == 0)
        k_steps = lane_d // tk
        max_tm = max(pack_m,
                     _max_tm_under_budget(budget, tn, tk, k_steps, cb, ob))

    tm = _pick_tm(M, pack_m, min(max_tm, 1024))
    M_pad = _round_up(M, tm)

    # v7x has two TensorCores sharing the parallel grid axes: make sure there
    # are at least two parallel blocks.
    if _is_v7x() and (M_pad // tm) * (lane_d // tn) < 2:
        if resident and lane_d % 256 == 0:
            tn = lane_d // 2
        elif tm >= 2 * pack_m:
            tm = _round_up(tm // 2, pack_m)
            M_pad = _round_up(M, tm)

    K_pad = _round_up(D, tk)   # == lane_d (tk divides lane_d)
    N_pad = _round_up(D, tn)   # == lane_d (tn divides lane_d)
    k_steps = K_pad // tk

    # ---- cast + pad (fused into the pallas_call inputs) -----------------
    if x2d.dtype != cdt:
        x2d = x2d.astype(cdt)
    w = weight.astype(cdt) if weight.dtype != cdt else weight
    if (M_pad, K_pad) != (M, D):
        x2d = jnp.pad(x2d, ((0, M_pad - M), (0, K_pad - D)))
    if (K_pad, N_pad) != (D, D):
        w = jnp.pad(w, ((0, K_pad - D), (0, N_pad - D)))

    grid = (M_pad // tm, N_pad // tn, k_steps)

    # Honest streamed-traffic estimate: x re-read per N block, W per M block.
    cost = pl.CostEstimate(
        flops=2 * M_pad * N_pad * K_pad,
        transcendentals=0,
        bytes_accessed=(M_pad * K_pad * cb) * (N_pad // tn)
        + (K_pad * N_pad * cb) * (M_pad // tm)
        + M_pad * N_pad * ob,
    )

    if k_steps == 1:
        kernel = _matmul_relu_kernel_1k
        scratch = ()
    else:
        kernel = _matmul_relu_kernel_acc
        scratch = (pltpu.VMEM((tm, tn), jnp.float32),)

    out2d = pl.pallas_call(
        kernel,
        out_shape=jax.ShapeDtypeStruct((M_pad, N_pad), out_dtype),
        grid_spec=pltpu.PrefetchScalarGridSpec(
            num_scalar_prefetch=0,
            grid=grid,
            in_specs=[
                pl.BlockSpec((tm, tk), lambda i, j, k: (i, k)),
                pl.BlockSpec((tk, tn), lambda i, j, k: (k, j)),
            ],
            out_specs=pl.BlockSpec((tm, tn), lambda i, j, k: (i, j)),
            scratch_shapes=scratch,
        ),
        compiler_params=pltpu.CompilerParams(
            dimension_semantics=("parallel", "parallel", "arbitrary"),
            vmem_limit_bytes=vmem_limit,
            allow_input_fusion=[True, True],
        ),
        cost_estimate=cost,
    )(x2d, w)

    out2d = out2d[:M, :D]
    return out2d.reshape(orig_shape)


if __name__ == "__main__":
    key = jax.random.PRNGKey(0)
    k_x, k_w, k_x2, k_w2 = jax.random.split(key, 4)

    # Shapes implied by the module: [batch, seq, hidden] @ [hidden, hidden].
    batch, seq, hidden = 2, 8, 32
    x = jax.random.normal(k_x, (batch, seq, hidden), dtype=jnp.float32)
    weight = jax.random.normal(k_w, (hidden, hidden), dtype=jnp.float32)

    # 1) Exact-f32 operand path: must match the f32 reference tightly.
    out_f32 = jax.block_until_ready(
        learnable_kernel_forward(x, weight, compute_dtype=jnp.float32))
    ref_f32 = jnp.maximum(x @ weight, 0.0)
    assert out_f32.shape == ref_f32.shape
    assert jnp.allclose(out_f32, ref_f32, atol=1e-5, rtol=1e-5)

    # 2) Default bf16-operand / f32-accumulate path: compare against the same
    #    mixed-precision reference.
    out_bf = jax.block_until_ready(learnable_kernel_forward(x, weight))
    ref_bf = jnp.maximum(
        jnp.dot(x.astype(jnp.bfloat16), weight.astype(jnp.bfloat16),
                preferred_element_type=jnp.float32), 0.0)
    assert out_bf.shape == ref_bf.shape
    assert jnp.allclose(out_bf, ref_bf, atol=2e-3, rtol=2e-3)

    # 3) Larger shape exercising 128-lane padding + multi-parallel-block grid.
    b2, s2, h2 = 2, 96, 160
    x2 = jax.random.normal(k_x2, (b2, s2, h2), dtype=jnp.float32)
    w2 = jax.random.normal(k_w2, (h2, h2), dtype=jnp.float32)
    out2 = jax.block_until_ready(learnable_kernel_forward(x2, w2))
    ref2 = jnp.maximum(
        jnp.dot(x2.astype(jnp.bfloat16), w2.astype(jnp.bfloat16),
                preferred_element_type=jnp.float32), 0.0)
    assert out2.shape == ref2.shape
    assert jnp.allclose(out2, ref2, atol=5e-3, rtol=5e-3)

    print("KERNEL_OK")
</pallas_src>

<mosaic_0001>
module attributes {stable_mosaic.version = 11 : i64} {
  func.func @_matmul_relu_kernel_1k(%arg0: i32, %arg1: i32, %arg2: i32, %arg3: memref<16x128xf32, #tpu.memory_space<vmem>>, %arg4: memref<128x128xf32, #tpu.memory_space<vmem>>, %arg5: memref<16x128xf32, #tpu.memory_space<vmem>>) attributes {dimension_semantics = [#tpu.dimension_semantics<parallel>, #tpu.dimension_semantics<parallel>, #tpu.dimension_semantics<arbitrary>], iteration_bounds = array<i64: 1, 1, 1>, scalar_prefetch = 0 : i64, scratch_operands = 0 : i64, tpu.core_type = #tpu.core_type<tc>, window_params = [{transform_indices = @transform_0, window_bounds = array<i64: 16, 128>}, {transform_indices = @transform_1, window_bounds = array<i64: 128, 128>}, {transform_indices = @transform_2, window_bounds = array<i64: 16, 128>}]} {
    %c0 = arith.constant 0 : index
    %c0_0 = arith.constant 0 : index
    %0 = vector.load %arg3[%c0, %c0_0] : memref<16x128xf32, #tpu.memory_space<vmem>>, vector<16x128xf32>
    %c0_1 = arith.constant 0 : index
    %c0_2 = arith.constant 0 : index
    %1 = vector.load %arg4[%c0_1, %c0_2] : memref<128x128xf32, #tpu.memory_space<vmem>>, vector<128x128xf32>
    %cst = arith.constant dense<0.000000e+00> : vector<16x128xf32>
    %2 = tpu.matmul %0, %1, %cst {dimension_numbers = #tpu.dot_dimension_numbers<[1], [0], [0], [1], [0, 0, 1, 1], [], []>} : vector<16x128xf32>, vector<128x128xf32>, vector<16x128xf32> -> vector<16x128xf32>
    %cst_3 = arith.constant 0.000000e+00 : f32
    %3 = vector.broadcast %cst_3 : f32 to vector<16x128xf32>
    %4 = arith.maximumf %2, %3 : vector<16x128xf32>
    %c0_4 = arith.constant 0 : index
    %c0_5 = arith.constant 0 : index
    %5 = vector.load %arg5[%c0_4, %c0_5] : memref<16x128xf32, #tpu.memory_space<vmem>>, vector<16x128xf32>
    tpu.vector_store %arg5[%c0_4, %c0_5], %4 {strides = array<i32>} : memref<16x128xf32, #tpu.memory_space<vmem>>, vector<16x128xf32>,
    return
  }
  func.func @transform_0(%arg0: i32, %arg1: i32, %arg2: i32) -> (i32, i32) {
    %c0_i32 = arith.constant 0 : i32
    return %arg0, %arg2 : i32, i32
  }
  func.func @transform_1(%arg0: i32, %arg1: i32, %arg2: i32) -> (i32, i32) {
    %c0_i32 = arith.constant 0 : i32
    return %arg2, %arg1 : i32, i32
  }
  func.func @transform_2(%arg0: i32, %arg1: i32, %arg2: i32) -> (i32, i32) {
    %c0_i32 = arith.constant 0 : i32
    return %arg0, %arg1 : i32, i32
  }
}

</mosaic_0001>

<bundles_post_ra>
// kernel: tpu_custom_call.1
= control target key start
LH: loop header
LB: loop body
LE: loop exit
PB: predicated region body
PF: predicated region fallthrough
CT: control target
= control target key end

     0   :  { %7 = vsyncpa [#allocation3], 0  ;;  %s382_s0 = inlined_call_operand.hbm [shape: f32[16,128], index: 0, kind: input, shape index: {}]   ;;  %s383_s1 = inlined_call_operand.hbm [shape: f32[128,128], index: 1, kind: input, shape index: {}]   ;;  %s384_s2 = inlined_call_operand.hbm [shape: f32[16,128], index: 2, kind: output, shape index: {}]  }
   0x1   :  { %8 = vsyncpa [#allocation6], 0 }
   0x2   :  { %9 = vsyncpa [#allocation4], 0  ;;  %s317_s9 = smov [#allocation2]   ;;  %s245_s13 = scalar_lea.hbm %s382_s0, 256 }
   0x3   :  { %s15_s10 = sshll.u32 %s317_s9, 4  ;;  %p246_p0 = scmp.ne.s32.totalorder %s382_s0, %s245_s13  ;;  %s16_s10 = int_to_ptr.vmem [resolvable:$true] %s15_s10 }
   0x4   :  { %p249_p1 = scmp.lt.u32.totalorder %s245_s13, %s382_s0 }
   0x6   :  { %p251_p2 = pnand %p249_p1, %p246_p0 }
   0x8   :  { %254 = shalt.err (!%p251_p2)
}
   0x9   :  { %s255_s18 = scalar_lea.vmem %s16_s10, 256  ;;  %p260_p4 = scmp.lt.s32.totalorder %s16_s10, %s16_s10 }
   0xa   :  { %p256_p3 = scmp.ne.s32.totalorder %s16_s10, %s255_s18  ;;  %p261_p5 = scmp.lt.s32.totalorder %s255_s18, %s255_s18 }
   0xc   :  { %p262_p6 = por %p261_p5, %p260_p4 }
   0xe   :  { %p263_p7 = pnand %p262_p6, %p256_p3 }
  0x10   :  { %266 = shalt.err (!%p263_p7)
}
  0x11   :  { %s318_s19 = smov 128   ;;  %s319_s20 = smov 8  }
  0x12   :  { %21 = dma.hbm_to_vmem [thread:$0]  %s382_s0, 256, %s16_s10, [#allocation3], %s318_s19, %s318_s19, %s319_s20  }
  0x13   :  { %s320_s23 = smov [#allocation5]   ;;  %s267_s27 = scalar_lea.hbm %s383_s1, 2048 }
  0x14   :  { %s27_s24 = sshll.u32 %s320_s23, 4  ;;  %p268_p8 = scmp.ne.s32.totalorder %s383_s1, %s267_s27  ;;  %s28_s24 = int_to_ptr.vmem [resolvable:$true] %s27_s24 }
  0x15   :  { %p271_p9 = scmp.lt.u32.totalorder %s267_s27, %s383_s1 }
  0x17   :  { %p273_p10 = pnand %p271_p9, %p268_p8 }
  0x19   :  { %276 = shalt.err (!%p273_p10)
}
  0x1a   :  { %s277_s4 = scalar_lea.vmem %s28_s24, 2048  ;;  %p282_p12 = scmp.lt.s32.totalorder %s28_s24, %s28_s24 }
  0x1b   :  { %p278_p11 = scmp.ne.s32.totalorder %s28_s24, %s277_s4  ;;  %p283_p13 = scmp.lt.s32.totalorder %s277_s4, %s277_s4 }
  0x1d   :  { %p284_p0 = por %p283_p13, %p282_p12 }
  0x1f   :  { %p285_p1 = pnand %p284_p0, %p278_p11 }
  0x21   :  { %288 = shalt.err (!%p285_p1)
}
  0x22   :  { %33 = dma.hbm_to_vmem [thread:$0]  %s383_s1, 2048, %s28_s24, [#allocation6], %s318_s19, %s318_s19, %s319_s20  }
  0x23   :  { %311 = dma.done.wait [#allocation3], 256  }
  0x24   :  { %312 = vsyncadd [#allocation3], 4294967040 }
  0x25   :  { %313 = dma.done.wait [#allocation6], 2048  }
  0x26   :  { %314 = vsyncadd [#allocation6], 4294965248  ;;  %v42_v0 = vld [vmem:[#allocation5] sm:$0xff]  ;;  %v43_v1 = vld [vmem:[#allocation5 + $0x8] sm:$0xff]  ;;  %s321_s1 = smov [#allocation7]  }
  0x27   :  { %v44_v2 = vld [vmem:[#allocation5 + $0x10] sm:$0xff]  ;;  %v208_v3 = vpack.c.bf16 %v43_v1, %v42_v0  ;;  %v45_v4 = vld [vmem:[#allocation5 + $0x18] sm:$0xff]  ;;  %v46_v6 = vld [vmem:[#allocation5 + $0x20] sm:$0xff]  ;;  %s142_s6 = sshll.u32 %s321_s1, 4  ;;  %s143_s6 = int_to_ptr.vmem [resolvable:$true] %s142_s6 }
  0x28   :  { %v212_v5 = vpack.c.bf16 %v45_v4, %v44_v2  ;;  %v47_v7 = vld [vmem:[#allocation5 + $0x28] sm:$0xff]  ;;  %v40_v9 = vld [vmem:[#allocation2] sm:$0xff]  ;;  %v49_v11 = vld [vmem:[#allocation5 + $0x38] sm:$0xff]  ;;  %s289_s7 = scalar_lea.vmem %s143_s6, 256  ;;  %p294_p3 = scmp.lt.s32.totalorder %s143_s6, %s143_s6 }
  0x29   :  { %209 = vmatprep.subr.bf16.mxu0 %v208_v3  ;;  %v216_v8 = vpack.c.bf16 %v47_v7, %v46_v6  ;;  %v48_v10 = vld [vmem:[#allocation5 + $0x30] sm:$0xff]  ;;  %205 = vmatprep.mubr.f32.mxu0 %v40_v9  ;;  %v50_v13 = vld [vmem:[#allocation5 + $0x40] sm:$0xff]  ;;  %v51_v14 = vld [vmem:[#allocation5 + $0x48] sm:$0xff]  ;;  %p290_p2 = scmp.ne.s32.totalorder %s143_s6, %s289_s7  ;;  %p295_p4 = scmp.lt.s32.totalorder %s289_s7, %s289_s7 }
  0x2a   :  { %211 = vmatpush3.bf16.msra.mxu0 %v208_v3  ;;  %v220_v12 = vpack.c.bf16 %v49_v11, %v48_v10  ;;  %v224_v15 = vpack.c.bf16 %v51_v14, %v50_v13  ;;  %v52_v16 = vld [vmem:[#allocation5 + $0x50] sm:$0xff]  ;;  %v53_v17 = vld [vmem:[#allocation5 + $0x58] sm:$0xff]  ;;  %v54_v19 = vld [vmem:[#allocation5 + $0x60] sm:$0xff] }
  0x2b   :  { %213 = vmatprep.subr.bf16.mxu0 %v212_v5  ;;  %v228_v18 = vpack.c.bf16 %v53_v17, %v52_v16  ;;  %v55_v20 = vld [vmem:[#allocation5 + $0x68] sm:$0xff]  ;;  %v56_v22 = vld [vmem:[#allocation5 + $0x70] sm:$0xff]  ;;  %v57_v23 = vld [vmem:[#allocation5 + $0x78] sm:$0xff]  ;;  %p296_p5 = por %p295_p4, %p294_p3 }
  0x2c   :  { %v232_v21 = vpack.c.bf16 %v55_v20, %v54_v19  ;;  %v236_v24 = vpack.c.bf16 %v57_v23, %v56_v22  ;;  %v41_v25 = vld [vmem:[#allocation2 + $0x8] sm:$0xff] }
  0x2d   :  { %p297_p6 = pnand %p296_p5, %p290_p2 }
  0x2e   :  { %215 = vmatpush3.bf16.msra.mxu0 %v212_v5 }
  0x2f   :  { %217 = vmatprep.subr.bf16.mxu0 %v216_v8 }
  0x32   :  { %219 = vmatpush3.bf16.msra.mxu0 %v216_v8 }
  0x33   :  { %221 = vmatprep.subr.bf16.mxu0 %v220_v12 }
  0x36   :  { %223 = vmatpush3.bf16.msra.mxu0 %v220_v12 }
  0x37   :  { %225 = vmatprep.subr.bf16.mxu0 %v224_v15 }
  0x3a   :  { %227 = vmatpush3.bf16.msra.mxu0 %v224_v15 }
  0x3b   :  { %229 = vmatprep.subr.bf16.mxu0 %v228_v18 }
  0x3e   :  { %231 = vmatpush3.bf16.msra.mxu0 %v228_v18 }
  0x3f   :  { %233 = vmatprep.subr.bf16.mxu0 %v232_v21 }
  0x42   :  { %235 = vmatpush3.bf16.msra.mxu0 %v232_v21 }
  0x43   :  { %237 = vmatprep.subr.bf16.mxu0 %v236_v24 }
  0x46   :  { %239 = vmatpush3.bf16.msra.mxu0 %v236_v24 }
  0x49   :  { %206 = vmatmul.mubr.f32.vlgmr.msra.gmra.mrb[0].mxu0 %v41_v25 }
 0x11c   :  { %v207_v26 = vpop.f32.mrb[0].mxu0 }
 0x11d   :  { %v134_v27 = vmax.f32 %v207_v26, 0.0  ;;  %v124_v28 = vpop.f32.mrb[1].mxu0 }
 0x11e   :  { %v133_v29 = vmax.f32 %v124_v28, 0.0 }
 0x11f   :  { %136 = vst [vmem:[#allocation7 + $0x8] sm:$0xff] %v134_v27 }
 0x120   :  { %135 = vst [vmem:[#allocation7] sm:$0xff] %v133_v29 }
 0x121   :  { %300 = shalt.err (!%p297_p6)
}
 0x122   :  { %s301_s10 = scalar_lea.hbm %s384_s2, 256 }
 0x123   :  { %p302_p7 = scmp.ne.s32.totalorder %s384_s2, %s301_s10  ;;  %p305_p8 = scmp.lt.u32.totalorder %s301_s10, %s384_s2 }
 0x125   :  { %p307_p9 = pnand %p305_p8, %p302_p7 }
 0x127   :  { %310 = shalt.err (!%p307_p9)
}
 0x128   :  { %148 = dma.vmem_to_hbm [thread:$0]  %s143_s6, 256, %s384_s2, [#allocation4], %s318_s19, %s318_s19, %s319_s20  }
 0x129   :  { %315 = dma.done.wait [#allocation4], 256  }
 0x12a   :  { %316 = vsyncadd [#allocation4], 4294967040 }
 0x12b   :  { %152 = vsyncpa [#allocation3], 1 }
 0x12c   :  { %153 = vsyncpa [#allocation6], 1 }
 0x12d   :  { %154 = vsyncpa [#allocation4], 1 }

</bundles_post_ra>
